<compile_context>
chip_gen: v5e
topology: v5e:2x2
jax: 0.10.0
libtpu: 0.0.40
codegen_flags: <defaults>
</compile_context>

<pallas_src>
import functools

import numpy as np
import jax
import jax.numpy as jnp
from jax.experimental import pallas as pl
from jax.experimental.pallas import tpu as pltpu

# ----------------------- config (SDFNetwork defaults) ------------------------
NUM_LEVELS = 16            # HashEncoding(num_levels=16, ...)
FEATS_PER_LEVEL = 2
MIN_RES = 16
MAX_RES = 1024             # nerfstudio HashEncoding default max_res
LOG2_HASHMAP_SIZE = 12     # hashmap_size=12
TABLE_SIZE = 2 ** LOG2_HASHMAP_SIZE
HASH_INIT_SCALE = 0.001
ENC_DIM = NUM_LEVELS * FEATS_PER_LEVEL    # 32
NUM_CORNERS = 8
HIDDEN_DIM = 64
OUT_DIM = 1
CLIP_SDF = None            # SDFNetwork default (clamp skipped when None)

_PRIMES = jnp.array([1, 2654435761, 805459861], dtype=jnp.uint32)


def _round_up(v, m):
    return (v + m - 1) // m * m


# ----------------------------- hash encoding glue ----------------------------
def _hash_fn(coords_i32):
    """Instant-NGP spatial hash; coords_i32: (..., 3) non-negative int32.

    Returns int32 indices into the concatenated (levels * table_size) table.
    uint32 modular arithmetic matches the PyTorch int64 reference because
    TABLE_SIZE divides 2**32 and all coordinates are non-negative.
    """
    c = coords_i32.astype(jnp.uint32) * _PRIMES
    h = c[..., 0] ^ c[..., 1] ^ c[..., 2]
    h = h % jnp.uint32(TABLE_SIZE)
    level_off = jnp.arange(NUM_LEVELS, dtype=jnp.uint32) * jnp.uint32(TABLE_SIZE)
    return (h + level_off).astype(jnp.int32)        # (..., NUM_LEVELS)


def hash_encode_inputs(x01, hash_table, scalings):
    """x01: (N, 3) in [0, 1].

    Returns the kernel inputs in lane-dense, point-last layout:
      feats_t: (8*ENC_DIM, N) bf16   gathered corner features
      off_t:   (3*ENC_DIM, N) f32    fractional offsets repeated per feature
    """
    n = x01.shape[0]
    scaled = x01[:, None, :] * scalings[None, :, None]          # (N, L, 3)
    sc = jnp.ceil(scaled).astype(jnp.int32)
    sf = jnp.floor(scaled).astype(jnp.int32)
    off = scaled - sf.astype(scaled.dtype)                      # (N, L, 3)

    cx, cy, cz = sc[..., 0], sc[..., 1], sc[..., 2]
    fx, fy, fz = sf[..., 0], sf[..., 1], sf[..., 2]

    def corner(a, b, c):
        return _hash_fn(jnp.stack([a, b, c], axis=-1))          # (N, L)

    # corner ordering == nerfstudio HashEncoding.pytorch_fwd hashed_0..hashed_7
    h = jnp.stack([
        corner(cx, cy, cz),   # 0
        corner(cx, fy, fz),   # 1
        corner(fx, fy, cz),   # 2
        corner(fx, fy, fz),   # 3
        corner(cx, cy, fz),   # 4
        corner(fx, cy, cz),   # 5
        corner(fx, cy, fz),   # 6
        corner(cx, fy, cz),   # 7
    ], axis=0)                                                  # (8, N, L)

    # TODO(synk): the data-dependent hash-table gather stays in plain JAX; the
    # 256 KiB (bf16) table would fit in VMEM for an in-kernel gather, but TPU
    # dynamic VMEM gather is slow -- benchmark before moving it in.
    feats = jnp.take(hash_table, h, axis=0).astype(jnp.bfloat16)        # (8, N, L, F)
    feats_t = feats.transpose(0, 2, 3, 1).reshape(NUM_CORNERS * ENC_DIM, n)

    off_rep = jnp.repeat(off, FEATS_PER_LEVEL, axis=1)                   # (N, L*F, 3)
    off_t = off_rep.transpose(2, 1, 0).reshape(3 * ENC_DIM, n).astype(jnp.float32)
    return feats_t, off_t


# --------------------------------- Pallas kernel -----------------------------
def _sdf_kernel(feats_ref, off_ref, w1t_ref, w2t_ref, w3_ref, out_ref, *, clip_sdf):
    # Trilerp weights are derived in-kernel from the fractional offsets (VPU)
    # instead of streaming an (8, N, 32) weight tensor from HBM.
    ox = off_ref[0 * ENC_DIM:1 * ENC_DIM, :]                    # (32, TN) f32
    oy = off_ref[1 * ENC_DIM:2 * ENC_DIM, :]
    oz = off_ref[2 * ENC_DIM:3 * ENC_DIM, :]

    def f(c):   # corner features, upcast bf16 -> f32 (v5e has no bf16 VALU)
        return feats_ref[c * ENC_DIM:(c + 1) * ENC_DIM, :].astype(jnp.float32)

    # Pairwise lerps in exactly the nerfstudio HashEncoding.pytorch_fwd order
    # (this also fixes the corner/weight pairing of the previous version).
    f03 = f(0) * ox + f(3) * (1.0 - ox)
    f12 = f(1) * ox + f(2) * (1.0 - ox)
    f56 = f(5) * ox + f(6) * (1.0 - ox)
    f47 = f(4) * ox + f(7) * (1.0 - ox)
    f0312 = f03 * oy + f12 * (1.0 - oy)
    f4756 = f47 * oy + f56 * (1.0 - oy)
    enc = f0312 * oz + f4756 * (1.0 - oz)                       # (32, TN)

    # Bias-free MLP with ReLU (tcnn FullyFusedMLP, output_activation=None).
    # Activations stay point-last so every op and the final store are lane-dense.
    h = jnp.dot(w1t_ref[...], enc, preferred_element_type=jnp.float32)   # (64, TN)
    h = jnp.maximum(h, 0.0)
    h = jnp.dot(w2t_ref[...], h, preferred_element_type=jnp.float32)     # (64, TN)
    h = jnp.maximum(h, 0.0)
    # final 64 -> 1 layer: VPU multiply + sublane reduce (M=1 MXU matmul is wasted)
    o = jnp.sum(h * w3_ref[...], axis=0, keepdims=True)                  # (1, TN)
    if clip_sdf is not None:
        o = jnp.clip(o, -clip_sdf, clip_sdf)
    out_ref[...] = o.astype(out_ref.dtype)


def sdf_forward(x, params, *, tile_n=1024, clip_sdf=CLIP_SDF):
    """Forward pass of SDFNetwork.  x: (N, 3) points in [-1, 1] -> (N, 1) SDF."""
    # TODO(synk): only mode='normal' of the customized encoder is implemented
    # (the W/N/M/B1/B2 watermarking modes have no reference semantics here).
    hash_table, scalings, w1, w2, w3 = params
    n = x.shape[0]

    # Streamed bytes per point: 512 (bf16 feats) + 384 (f32 offsets) ~= 0.9 KiB
    # (vs 2 KiB before).  Double-buffered block footprint at tile_n=1024 is a
    # few MiB, comfortably inside the 32 MiB scoped VMEM on v5e/v6e/v7x
    # (v7x only has 64 MiB physical VMEM: keep tile_n <= 2048 there).
    tile_n = min(tile_n, _round_up(n, 128))
    n_pad = _round_up(n, tile_n)

    x = x.astype(jnp.float32)
    if n_pad != n:
        x = jnp.concatenate([x, jnp.zeros((n_pad - n, 3), jnp.float32)], axis=0)

    x01 = (x + 1.0) / 2.0                                        # (x + 1) / 2
    feats_t, off_t = hash_encode_inputs(x01, hash_table, scalings)

    # transposed weights so activations are (features, points)
    w1t = jnp.transpose(w1).astype(jnp.float32)                  # (64, 32)
    w2t = jnp.transpose(w2).astype(jnp.float32)                  # (64, 64)
    w3c = w3.astype(jnp.float32)                                 # (64, 1)

    grid = (n_pad // tile_n,)
    kernel = functools.partial(_sdf_kernel, clip_sdf=clip_sdf)
    out_row = pl.pallas_call(
        kernel,
        out_shape=jax.ShapeDtypeStruct((1, n_pad), jnp.float32),
        grid=grid,
        in_specs=[
            pl.BlockSpec((NUM_CORNERS * ENC_DIM, tile_n), lambda i: (0, i)),
            pl.BlockSpec((3 * ENC_DIM, tile_n), lambda i: (0, i)),
            pl.BlockSpec((HIDDEN_DIM, ENC_DIM), lambda i: (0, 0)),
            pl.BlockSpec((HIDDEN_DIM, HIDDEN_DIM), lambda i: (0, 0)),
            pl.BlockSpec((HIDDEN_DIM, OUT_DIM), lambda i: (0, 0)),
        ],
        out_specs=pl.BlockSpec((1, tile_n), lambda i: (0, i)),
        compiler_params=pltpu.CompilerParams(
            dimension_semantics=("parallel",),   # shards the grid across v7x's 2 TCs
            vmem_limit_bytes=32 * 1024 * 1024),
    )(feats_t, off_t, w1t, w2t, w3c)
    return out_row.reshape(n_pad, OUT_DIM)[:n]


# ------------------------------ parameter init --------------------------------
def init_params(key):
    k_table, k1, k2, k3 = jax.random.split(key, 4)
    hash_table = (jax.random.uniform(
        k_table, (TABLE_SIZE * NUM_LEVELS, FEATS_PER_LEVEL),
        minval=-1.0, maxval=1.0) * HASH_INIT_SCALE).astype(jnp.float32)

    growth = np.exp((np.log(MAX_RES) - np.log(MIN_RES)) / (NUM_LEVELS - 1))
    scalings = jnp.asarray(
        np.floor(MIN_RES * growth ** np.arange(NUM_LEVELS)), dtype=jnp.float32)

    def lin(k, fan_in, fan_out):
        bound = float(np.sqrt(6.0 / fan_in))
        return jax.random.uniform(k, (fan_in, fan_out),
                                  minval=-bound, maxval=bound,
                                  dtype=jnp.float32)

    w1 = lin(k1, ENC_DIM, HIDDEN_DIM)        # 32 -> 64
    w2 = lin(k2, HIDDEN_DIM, HIDDEN_DIM)     # 64 -> 64
    w3 = lin(k3, HIDDEN_DIM, OUT_DIM)        # 64 -> 1
    return hash_table, scalings, w1, w2, w3


# ------------------------- pure-JAX reference (for checking) ------------------
def reference_forward(x, params, *, clip_sdf=CLIP_SDF):
    """Literal translation of nerfstudio HashEncoding.pytorch_fwd + bias-free
    ReLU MLP.  Independent of the kernel's packing/layout path; gathered
    features get the same bf16 round-trip that the kernel streams."""
    hash_table, scalings, w1, w2, w3 = params
    x01 = (x.astype(jnp.float32) + 1.0) / 2.0
    scaled = x01[:, None, :] * scalings[None, :, None]           # (N, L, 3)
    sc = jnp.ceil(scaled).astype(jnp.int32)
    sf = jnp.floor(scaled).astype(jnp.int32)
    off = scaled - sf.astype(scaled.dtype)

    cx, cy, cz = sc[..., 0], sc[..., 1], sc[..., 2]
    fx, fy, fz = sf[..., 0], sf[..., 1], sf[..., 2]

    def hsh(a, b, c):
        return _hash_fn(jnp.stack([a, b, c], axis=-1))

    def g(idx):
        return hash_table[idx].astype(jnp.bfloat16).astype(jnp.float32)  # (N, L, F)

    f0 = g(hsh(cx, cy, cz)); f1 = g(hsh(cx, fy, fz))
    f2 = g(hsh(fx, fy, cz)); f3 = g(hsh(fx, fy, fz))
    f4 = g(hsh(cx, cy, fz)); f5 = g(hsh(fx, cy, cz))
    f6 = g(hsh(fx, cy, fz)); f7 = g(hsh(cx, fy, cz))

    ox, oy, oz = off[..., 0:1], off[..., 1:2], off[..., 2:3]
    f03 = f0 * ox + f3 * (1 - ox)
    f12 = f1 * ox + f2 * (1 - ox)
    f56 = f5 * ox + f6 * (1 - ox)
    f47 = f4 * ox + f7 * (1 - ox)
    f0312 = f03 * oy + f12 * (1 - oy)
    f4756 = f47 * oy + f56 * (1 - oy)
    enc = (f0312 * oz + f4756 * (1 - oz)).reshape(x.shape[0], ENC_DIM)

    h = jnp.maximum(enc @ w1, 0.0)
    h = jnp.maximum(h @ w2, 0.0)
    o = h @ w3
    if clip_sdf is not None:
        o = jnp.clip(o, -clip_sdf, clip_sdf)
    return o


# ------------------------------------ main ------------------------------------
if __name__ == "__main__":
    key = jax.random.PRNGKey(0)
    kx, kp = jax.random.split(key)

    n = 300   # deliberately not a multiple of 128 to exercise padding
    x = jax.random.uniform(kx, (n, 3), minval=-1.0, maxval=1.0,
                           dtype=jnp.float32)
    params = init_params(kp)

    out = jax.block_until_ready(sdf_forward(x, params))
    assert out.shape == (n, OUT_DIM)

    ref = jax.block_until_ready(reference_forward(x, params))
    diff = float(np.max(np.abs(np.asarray(out) - np.asarray(ref))))
    assert np.allclose(np.asarray(out), np.asarray(ref),
                       atol=1e-4, rtol=1e-2), f"max abs diff {diff}"
    print("KERNEL_OK")
</pallas_src>

<mosaic_0001>
module attributes {stable_mosaic.version = 11 : i64} {
  func.func @_sdf_kernel(%arg0: i32, %arg1: memref<256x384xbf16, #tpu.memory_space<vmem>>, %arg2: memref<96x384xf32, #tpu.memory_space<vmem>>, %arg3: memref<64x32xf32, #tpu.memory_space<vmem>>, %arg4: memref<64x64xf32, #tpu.memory_space<vmem>>, %arg5: memref<64x1xf32, #tpu.memory_space<vmem>>, %arg6: memref<1x384xf32, #tpu.memory_space<vmem>>) attributes {dimension_semantics = [#tpu.dimension_semantics<parallel>], iteration_bounds = array<i64: 1>, scalar_prefetch = 0 : i64, scratch_operands = 0 : i64, tpu.core_type = #tpu.core_type<tc>, window_params = [{transform_indices = @transform_0, window_bounds = array<i64: 256, 384>}, {transform_indices = @transform_1, window_bounds = array<i64: 96, 384>}, {pipeline_mode = #tpu.pipeline_mode<synchronous>, transform_indices = @transform_2, window_bounds = array<i64: 64, 32>}, {pipeline_mode = #tpu.pipeline_mode<synchronous>, transform_indices = @transform_3, window_bounds = array<i64: 64, 64>}, {pipeline_mode = #tpu.pipeline_mode<synchronous>, transform_indices = @transform_4, window_bounds = array<i64: 64, 1>}, {transform_indices = @transform_5, window_bounds = array<i64: 1, 384>}]} {
    %c0 = arith.constant 0 : index
    %c0_0 = arith.constant 0 : index
    %0 = vector.load %arg2[%c0, %c0_0] : memref<96x384xf32, #tpu.memory_space<vmem>>, vector<32x384xf32>
    %c32 = arith.constant 32 : index
    %c0_1 = arith.constant 0 : index
    %1 = vector.load %arg2[%c32, %c0_1] : memref<96x384xf32, #tpu.memory_space<vmem>>, vector<32x384xf32>
    %c64 = arith.constant 64 : index
    %c0_2 = arith.constant 0 : index
    %2 = vector.load %arg2[%c64, %c0_2] : memref<96x384xf32, #tpu.memory_space<vmem>>, vector<32x384xf32>
    %c0_3 = arith.constant 0 : index
    %c0_4 = arith.constant 0 : index
    %3 = vector.load %arg1[%c0_3, %c0_4] : memref<256x384xbf16, #tpu.memory_space<vmem>>, vector<32x384xbf16>
    %4 = arith.extf %3 : vector<32x384xbf16> to vector<32x384xf32>
    %5 = arith.mulf %4, %0 : vector<32x384xf32>
    %c96 = arith.constant 96 : index
    %c0_5 = arith.constant 0 : index
    %6 = vector.load %arg1[%c96, %c0_5] : memref<256x384xbf16, #tpu.memory_space<vmem>>, vector<32x384xbf16>
    %7 = arith.extf %6 : vector<32x384xbf16> to vector<32x384xf32>
    %cst = arith.constant 1.000000e+00 : f32
    %8 = vector.broadcast %cst : f32 to vector<32x384xf32>
    %9 = arith.subf %8, %0 : vector<32x384xf32>
    %10 = arith.mulf %7, %9 : vector<32x384xf32>
    %11 = arith.addf %5, %10 : vector<32x384xf32>
    %c32_6 = arith.constant 32 : index
    %c0_7 = arith.constant 0 : index
    %12 = vector.load %arg1[%c32_6, %c0_7] : memref<256x384xbf16, #tpu.memory_space<vmem>>, vector<32x384xbf16>
    %13 = arith.extf %12 : vector<32x384xbf16> to vector<32x384xf32>
    %14 = arith.mulf %13, %0 : vector<32x384xf32>
    %c64_8 = arith.constant 64 : index
    %c0_9 = arith.constant 0 : index
    %15 = vector.load %arg1[%c64_8, %c0_9] : memref<256x384xbf16, #tpu.memory_space<vmem>>, vector<32x384xbf16>
    %16 = arith.extf %15 : vector<32x384xbf16> to vector<32x384xf32>
    %cst_10 = arith.constant 1.000000e+00 : f32
    %17 = vector.broadcast %cst_10 : f32 to vector<32x384xf32>
    %18 = arith.subf %17, %0 : vector<32x384xf32>
    %19 = arith.mulf %16, %18 : vector<32x384xf32>
    %20 = arith.addf %14, %19 : vector<32x384xf32>
    %c160 = arith.constant 160 : index
    %c0_11 = arith.constant 0 : index
    %21 = vector.load %arg1[%c160, %c0_11] : memref<256x384xbf16, #tpu.memory_space<vmem>>, vector<32x384xbf16>
    %22 = arith.extf %21 : vector<32x384xbf16> to vector<32x384xf32>
    %23 = arith.mulf %22, %0 : vector<32x384xf32>
    %c192 = arith.constant 192 : index
    %c0_12 = arith.constant 0 : index
    %24 = vector.load %arg1[%c192, %c0_12] : memref<256x384xbf16, #tpu.memory_space<vmem>>, vector<32x384xbf16>
    %25 = arith.extf %24 : vector<32x384xbf16> to vector<32x384xf32>
    %cst_13 = arith.constant 1.000000e+00 : f32
    %26 = vector.broadcast %cst_13 : f32 to vector<32x384xf32>
    %27 = arith.subf %26, %0 : vector<32x384xf32>
    %28 = arith.mulf %25, %27 : vector<32x384xf32>
    %29 = arith.addf %23, %28 : vector<32x384xf32>
    %c128 = arith.constant 128 : index
    %c0_14 = arith.constant 0 : index
    %30 = vector.load %arg1[%c128, %c0_14] : memref<256x384xbf16, #tpu.memory_space<vmem>>, vector<32x384xbf16>
    %31 = arith.extf %30 : vector<32x384xbf16> to vector<32x384xf32>
    %32 = arith.mulf %31, %0 : vector<32x384xf32>
    %c224 = arith.constant 224 : index
    %c0_15 = arith.constant 0 : index
    %33 = vector.load %arg1[%c224, %c0_15] : memref<256x384xbf16, #tpu.memory_space<vmem>>, vector<32x384xbf16>
    %34 = arith.extf %33 : vector<32x384xbf16> to vector<32x384xf32>
    %cst_16 = arith.constant 1.000000e+00 : f32
    %35 = vector.broadcast %cst_16 : f32 to vector<32x384xf32>
    %36 = arith.subf %35, %0 : vector<32x384xf32>
    %37 = arith.mulf %34, %36 : vector<32x384xf32>
    %38 = arith.addf %32, %37 : vector<32x384xf32>
    %39 = arith.mulf %11, %1 : vector<32x384xf32>
    %cst_17 = arith.constant 1.000000e+00 : f32
    %40 = vector.broadcast %cst_17 : f32 to vector<32x384xf32>
    %41 = arith.subf %40, %1 : vector<32x384xf32>
    %42 = arith.mulf %20, %41 : vector<32x384xf32>
    %43 = arith.addf %39, %42 : vector<32x384xf32>
    %44 = arith.mulf %38, %1 : vector<32x384xf32>
    %cst_18 = arith.constant 1.000000e+00 : f32
    %45 = vector.broadcast %cst_18 : f32 to vector<32x384xf32>
    %46 = arith.subf %45, %1 : vector<32x384xf32>
    %47 = arith.mulf %29, %46 : vector<32x384xf32>
    %48 = arith.addf %44, %47 : vector<32x384xf32>
    %49 = arith.mulf %43, %2 : vector<32x384xf32>
    %cst_19 = arith.constant 1.000000e+00 : f32
    %50 = vector.broadcast %cst_19 : f32 to vector<32x384xf32>
    %51 = arith.subf %50, %2 : vector<32x384xf32>
    %52 = arith.mulf %48, %51 : vector<32x384xf32>
    %53 = arith.addf %49, %52 : vector<32x384xf32>
    %c0_20 = arith.constant 0 : index
    %c0_21 = arith.constant 0 : index
    %54 = vector.load %arg3[%c0_20, %c0_21] : memref<64x32xf32, #tpu.memory_space<vmem>>, vector<64x32xf32>
    %cst_22 = arith.constant dense<0.000000e+00> : vector<64x384xf32>
    %55 = tpu.matmul %54, %53, %cst_22 {dimension_numbers = #tpu.dot_dimension_numbers<[1], [0], [0], [1], [0, 0, 1, 1], [], []>} : vector<64x32xf32>, vector<32x384xf32>, vector<64x384xf32> -> vector<64x384xf32>
    %cst_23 = arith.constant 0.000000e+00 : f32
    %56 = vector.broadcast %cst_23 : f32 to vector<64x384xf32>
    %57 = arith.maximumf %55, %56 : vector<64x384xf32>
    %c0_24 = arith.constant 0 : index
    %c0_25 = arith.constant 0 : index
    %58 = vector.load %arg4[%c0_24, %c0_25] : memref<64x64xf32, #tpu.memory_space<vmem>>, vector<64x64xf32>
    %cst_26 = arith.constant dense<0.000000e+00> : vector<64x384xf32>
    %59 = tpu.matmul %58, %57, %cst_26 {dimension_numbers = #tpu.dot_dimension_numbers<[1], [0], [0], [1], [0, 0, 1, 1], [], []>} : vector<64x64xf32>, vector<64x384xf32>, vector<64x384xf32> -> vector<64x384xf32>
    %cst_27 = arith.constant 0.000000e+00 : f32
    %60 = vector.broadcast %cst_27 : f32 to vector<64x384xf32>
    %61 = arith.maximumf %59, %60 : vector<64x384xf32>
    %c0_28 = arith.constant 0 : index
    %c0_29 = arith.constant 0 : index
    %62 = vector.load %arg5[%c0_28, %c0_29] : memref<64x1xf32, #tpu.memory_space<vmem>>, vector<64x1xf32>
    %63 = vector.broadcast %62 : vector<64x1xf32> to vector<64x384xf32>
    %64 = arith.mulf %61, %63 : vector<64x384xf32>
    %cst_30 = arith.constant dense<0.000000e+00> : vector<384xf32>
    %65 = vector.multi_reduction <add>, %64, %cst_30 [0] : vector<64x384xf32> to vector<384xf32>
    %66 = vector.shape_cast %65 : vector<384xf32> to vector<1x384xf32>
    %c0_31 = arith.constant 0 : index
    %c0_32 = arith.constant 0 : index
    %67 = vector.load %arg6[%c0_31, %c0_32] : memref<1x384xf32, #tpu.memory_space<vmem>>, vector<1x384xf32>
    tpu.vector_store %arg6[%c0_31, %c0_32], %66 {strides = array<i32>} : memref<1x384xf32, #tpu.memory_space<vmem>>, vector<1x384xf32>,
    return
  }
  func.func @transform_0(%arg0: i32) -> (i32, i32) {
    %c0_i32 = arith.constant 0 : i32
    %c0_i32_0 = arith.constant 0 : i32
    return %c0_i32, %arg0 : i32, i32
  }
  func.func @transform_1(%arg0: i32) -> (i32, i32) {
    %c0_i32 = arith.constant 0 : i32
    %c0_i32_0 = arith.constant 0 : i32
    return %c0_i32, %arg0 : i32, i32
  }
  func.func @transform_2(%arg0: i32) -> (i32, i32) {
    %c0_i32 = arith.constant 0 : i32
    %c0_i32_0 = arith.constant 0 : i32
    %c0_i32_1 = arith.constant 0 : i32
    return %c0_i32, %c0_i32_0 : i32, i32
  }
  func.func @transform_3(%arg0: i32) -> (i32, i32) {
    %c0_i32 = arith.constant 0 : i32
    %c0_i32_0 = arith.constant 0 : i32
    %c0_i32_1 = arith.constant 0 : i32
    return %c0_i32, %c0_i32_0 : i32, i32
  }
  func.func @transform_4(%arg0: i32) -> (i32, i32) {
    %c0_i32 = arith.constant 0 : i32
    %c0_i32_0 = arith.constant 0 : i32
    %c0_i32_1 = arith.constant 0 : i32
    return %c0_i32, %c0_i32_0 : i32, i32
  }
  func.func @transform_5(%arg0: i32) -> (i32, i32) {
    %c0_i32 = arith.constant 0 : i32
    %c0_i32_0 = arith.constant 0 : i32
    return %c0_i32, %arg0 : i32, i32
  }
}

</mosaic_0001>

<bundles_post_ra>
// kernel: tpu_custom_call.1
= control target key start
LH: loop header
LB: loop body
LE: loop exit
PB: predicated region body
PF: predicated region fallthrough
CT: control target
= control target key end

     0   :  { %10 = vsyncpa [#allocation3], 0  ;;  %s1584_s0 = inlined_call_operand.hbm [shape: bf16[256,384], index: 0, kind: input, shape index: {}]   ;;  %s1585_s1 = inlined_call_operand.hbm [shape: f32[96,384], index: 1, kind: input, shape index: {}]   ;;  %s1586_s2 = inlined_call_operand.vmem [shape: f32[64,32], index: 2, kind: input, shape index: {}]   ;;  %s1587_s3 = inlined_call_operand.vmem [shape: f32[64,64], index: 3, kind: input, shape index: {}]   ;;  %s1588_s4 = inlined_call_operand.vmem [shape: f32[64,1], index: 4, kind: input, shape index: {}]   ;;  %s1589_s5 = inlined_call_operand.hbm [shape: f32[1,384], index: 5, kind: output, shape index: {}]  }
   0x1   :  { %11 = vsyncpa [#allocation6], 0 }
   0x2   :  { %12 = vsyncpa [#allocation4], 0  ;;  %s17_s20 = sshll.u32 %s1584_s0, 4  ;;  %s1186_s21 = smov [#allocation2]   ;;  %s18_s20 = int_to_ptr.hbm [resolvable:$true] %s17_s20 }
   0x3   :  { %s19_s22 = sshll.u32 %s1186_s21, 4  ;;  %s30_s25 = sshll.u32 %s1585_s1, 4  ;;  %s20_s22 = int_to_ptr.vmem [resolvable:$true] %s19_s22  ;;  %s31_s25 = int_to_ptr.hbm [resolvable:$true] %s30_s25 }
   0x4   :  { %s1187_s26 = smov 192   ;;  %s1188_s27 = smov 12  }
   0x5   :  { %25 = dma.hbm_to_vmem [thread:$0]  %s18_s20, 6144, %s20_s22, [#allocation3], %s1187_s26, %s1187_s26, %s1188_s27  }
   0x6   :  { %s1189_s28 = smov [#allocation5]   ;;  %s1190_s30 = smov 384  }
   0x7   :  { %s32_s29 = sshll.u32 %s1189_s28, 4  ;;  %s1191_s6 = smov 24   ;;  %s33_s29 = int_to_ptr.vmem [resolvable:$true] %s32_s29 }
   0x8   :  { %38 = dma.hbm_to_vmem [thread:$0]  %s31_s25, 4608, %s33_s29, [#allocation6], %s1190_s30, %s1190_s30, %s1191_s6  }
   0x9   :  { %1180 = dma.done.wait [#allocation3], 6144  }
   0xa   :  { %1181 = vsyncadd [#allocation3], 4294961152 }
   0xb   :  { %1182 = dma.done.wait [#allocation6], 4608  }
   0xc   :  { %1183 = vsyncadd [#allocation6], 4294962688  ;;  %v62_v0 = vld [vmem:[#allocation5 + $0x48] sm:$0xff]  ;;  %v1234_v4 = vld [vmem:[#allocation2 + $0xb4] sm:$0xff]  ;;  %vm545_vm0 = vcmask 261120   ;;  %vm725_vm1 = vcmask 523264  }
   0xd   :  { %v74_v1 = vld [vmem:[#allocation5 + $0xa8] sm:$0xff]  ;;  %v150_v5 = vsub.f32 1.0, %v62_v0  ;;  %v1236_v6 = vld [vmem:[#allocation2 + $0x54] sm:$0xff]  ;;  %v138_v8 = vunpack.c.l.bf16 %v1234_v4  ;;  %vm1013_vm2 = vcmask 1040384   ;;  %s1030_s26 = sshll.u32 %s1589_s5, 4  ;;  %vm1015_vm3 = vcmask 1041408   ;;  %s1031_s26 = int_to_ptr.hbm [resolvable:$true] %s1030_s26 }
   0xe   :  { %v1230_v2 = vld [vmem:[#allocation5 + $0x108] sm:$0xff]  ;;  %v194_v9 = vunpack.c.l.bf16 %v1236_v6  ;;  %v1243_v11 = vld [vmem:[#allocation2 + $0x114] sm:$0xff]  ;;  %v426_v13 = vsub.f32 1.0, %v74_v1 }
   0xf   :  { %v1232_v3 = vld [vmem:[#allocation2 + $0x24] sm:$0xff]  ;;  %v270_v15 = vunpack.c.l.bf16 %v1243_v11  ;;  %v1252_v18 = vld [vmem:[#allocation2 + $0x174] sm:$0xff]  ;;  %v510_v19 = vsub.f32 1.0, %v1230_v2  ;;  %v162_v21 = vmul.f32 %v150_v5, %v138_v8 }
  0x10   :  { %v106_v7 = vunpack.c.l.bf16 %v1232_v3  ;;  %v1241_v10 = vld [vmem:[#allocation2 + $0x84] sm:$0xff]  ;;  %v206_v22 = vmul.f32 %v194_v9, %v62_v0  ;;  %v59_v24 = vld [vmem:[#allocation5 + $0x30] sm:$0xff]  ;;  %v1256_v25 = vld [vmem:[#allocation2 + $0x18] sm:$0xff]  ;;  %v378_v29 = vunpack.c.l.bf16 %v1252_v18 }
  0x11   :  { %v1245_v12 = vld [vmem:[#allocation2 + $0x144] sm:$0xff]  ;;  %v226_v14 = vunpack.c.l.bf16 %v1241_v10  ;;  %v282_v27 = vmul.f32 %v270_v15, %v62_v0  ;;  %v1263_v32 = vld [vmem:[#allocation2 + $0x78] sm:$0xff]  ;;  %v103_v35 = vunpack.c.l.bf16 %v1256_v25  ;;  %v147_v40 = vsub.f32 1.0, %v59_v24  ;;  %v71_v59 = vld [vmem:[#allocation5 + $0x90] sm:$0xff] }
  0x12   :  { %v302_v16 = vunpack.c.l.bf16 %v1245_v12  ;;  %v1250_v17 = vld [vmem:[#allocation2 + $0xe4] sm:$0xff]  ;;  %v118_v20 = vmul.f32 %v106_v7, %v62_v0  ;;  %v390_v39 = vmul.f32 %v378_v29, %v150_v5  ;;  %v1269_v42 = vld [vmem:[#allocation2 + $0x138] sm:$0xff]  ;;  %v223_v46 = vunpack.c.l.bf16 %v1263_v32  ;;  %v83_v60 = vld [vmem:[#allocation5 + $0xf0] sm:$0xff] }
  0x13   :  { %v346_v23 = vunpack.c.l.bf16 %v1250_v17  ;;  %v238_v26 = vmul.f32 %v226_v14, %v150_v5  ;;  %v1259_v30 = vld [vmem:[#allocation2 + $0xa8] sm:$0xff]  ;;  %v115_v44 = vmul.f32 %v103_v35, %v59_v24  ;;  %v1273_v47 = vld [vmem:[#allocation2 + $0xd8] sm:$0xff]  ;;  %v299_v56 = vunpack.c.l.bf16 %v1269_v42 }
  0x14   :  { %v314_v28 = vmul.f32 %v302_v16, %v150_v5  ;;  %v1261_v31 = vld [vmem:[#allocation2 + $0x48] sm:$0xff]  ;;  %v174_v33 = vadd.f32 %v162_v21, %v118_v20  ;;  %v135_v36 = vunpack.c.l.bf16 %v1259_v30  ;;  %v235_v54 = vmul.f32 %v223_v46, %v147_v40  ;;  %v56_v8 = vld [vmem:[#allocation5 + $0x18] sm:$0xff] }
  0x15   :  { %v358_v34 = vmul.f32 %v346_v23, %v62_v0  ;;  %v250_v37 = vadd.f32 %v238_v26, %v206_v22  ;;  %v1267_v41 = vld [vmem:[#allocation2 + $0x108] sm:$0xff]  ;;  %v191_v45 = vunpack.c.l.bf16 %v1261_v31  ;;  %v343_v62 = vunpack.c.l.bf16 %v1273_v47  ;;  %v1286_v20 = vld [vmem:[#allocation2 + $0x3c] sm:$0xff] }
  0x16   :  { %v326_v38 = vadd.f32 %v314_v28, %v282_v27  ;;  %v414_v43 = vmul.f32 %v174_v33, %v74_v1  ;;  %v159_v51 = vmul.f32 %v147_v40, %v135_v36  ;;  %v1275_v52 = vld [vmem:[#allocation2 + $0x168] sm:$0xff]  ;;  %v267_v55 = vunpack.c.l.bf16 %v1267_v41  ;;  %v1292_v35 = vld [vmem:[#allocation2 + $0xfc] sm:$0xff] }
  0x17   :  { %v402_v48 = vadd.f32 %v390_v39, %v358_v34  ;;  %v438_v49 = vmul.f32 %v426_v13, %v250_v37  ;;  %v203_v53 = vmul.f32 %v191_v45, %v59_v24  ;;  %v311_v5 = vmul.f32 %v299_v56, %v147_v40  ;;  %v1281_v9 = vld [vmem:[#allocation2 + $0xc] sm:$0xff]  ;;  %v1300_v45 = vld [vmem:[#allocation2 + $0x15c] sm:$0xff] }
  0x18   :  { %v474_v50 = vmul.f32 %v426_v13, %v326_v38  ;;  %v171_v61 = vadd.f32 %v159_v51, %v115_v44  ;;  %v279_v0 = vmul.f32 %v267_v55, %v59_v24  ;;  %v375_v7 = vunpack.c.l.bf16 %v1275_v52  ;;  %v1283_v13 = vld [vmem:[#allocation2 + $0x9c] sm:$0xff]  ;;  %v1288_v27 = vld [vmem:[#allocation2 + $0x6c] sm:$0xff] }
  0x19   :  { %v450_v57 = vadd.f32 %v438_v49, %v414_v43  ;;  %v462_v58 = vmul.f32 %v402_v48, %v74_v1  ;;  %v247_v63 = vadd.f32 %v235_v54, %v203_v53  ;;  %v355_v16 = vmul.f32 %v343_v62, %v59_v24  ;;  %v1295_v38 = vld [vmem:[#allocation2 + $0x12c] sm:$0xff]  ;;  %v68_v51 = vld [vmem:[#allocation5 + $0x78] sm:$0xff] }
  0x1a   :  { %v411_v1 = vmul.f32 %v171_v61, %v71_v59  ;;  %v323_v21 = vadd.f32 %v311_v5, %v279_v0  ;;  %v387_v22 = vmul.f32 %v375_v7, %v147_v40  ;;  %v423_v23 = vsub.f32 1.0, %v71_v59  ;;  %v1297_v39 = vld [vmem:[#allocation2 + $0xcc] sm:$0xff]  ;;  %v1303_v53 = vld [vmem:[#allocation5 + $0xd8] sm:$0xff]  ;;  %v1308_v0 = vld [vmem:[#allocation2] sm:$0xff] }
  0x1b   :  { %v486_v14 = vadd.f32 %v474_v50, %v462_v58  ;;  %v498_v15 = vmul.f32 %v450_v57, %v1230_v2  ;;  %v507_v26 = vsub.f32 1.0, %v83_v60  ;;  %v100_v29 = vunpack.c.l.bf16 %v1281_v9  ;;  %v1310_v5 = vld [vmem:[#allocation2 + $0x90] sm:$0xff] }
  0x1c   :  { %v132_v33 = vunpack.c.l.bf16 %v1283_v13  ;;  %v144_v34 = vsub.f32 1.0, %v56_v8  ;;  %v399_v36 = vadd.f32 %v387_v22, %v355_v16  ;;  %v435_v2 = vmul.f32 %v423_v23, %v247_v63 }
  0x1d   :  { %v522_v28 = vmul.f32 %v510_v19, %v486_v14  ;;  %v471_v24 = vmul.f32 %v423_v23, %v323_v21  ;;  %v188_v37 = vunpack.c.l.bf16 %v1286_v20  ;;  %v112_v43 = vmul.f32 %v100_v29, %v56_v8 }
  0x1e   :  { %v156_v44 = vmul.f32 %v144_v34, %v132_v33  ;;  %v220_v19 = vunpack.c.l.bf16 %v1288_v27  ;;  %v447_v46 = vadd.f32 %v435_v2, %v411_v1  ;;  %v459_v48 = vmul.f32 %v399_v36, %v71_v59  ;;  %v53_v59 = vld [vmem:[#allocation5] sm:$0xff]  ;;  %v1312_v1 = vld [vmem:[#allocation2 + $0x30] sm:$0xff] }
  0x1f   :  { %v534_v40 = vadd.f32 %v522_v28, %v498_v15  ;;  %v200_v49 = vmul.f32 %v188_v37, %v56_v8  ;;  %v264_v50 = vunpack.c.l.bf16 %v1292_v35  ;;  %v296_v56 = vunpack.c.l.bf16 %v1295_v38 }
  0x20   :  { %v168_v54 = vadd.f32 %v156_v44, %v112_v43  ;;  %v232_v55 = vmul.f32 %v220_v19, %v144_v34  ;;  %v340_v57 = vunpack.c.l.bf16 %v1297_v39  ;;  %v483_v58 = vadd.f32 %v471_v24, %v459_v48  ;;  %v1319_v24 = vld [vmem:[#allocation2 + $0xf0] sm:$0xff] }
  0x21   :  { %1089 = vmatpush.msra.mxu2 %v534_v40  ;;  %582 = vmatpush.msra.mxu0 %v534_v40  ;;  %v495_v61 = vmul.f32 %v447_v46, %v83_v60  ;;  %v276_v62 = vmul.f32 %v264_v50, %v56_v8  ;;  %v372_v63 = vunpack.c.l.bf16 %v1300_v45  ;;  %v308_v14 = vmul.f32 %v296_v56, %v144_v34  ;;  %v1315_v60 = vld [vmem:[#allocation2 + $0x60] sm:$0xff] }
  0x22   :  { %v244_v7 = vadd.f32 %v232_v55, %v200_v49  ;;  %v352_v15 = vmul.f32 %v340_v57, %v56_v8  ;;  %v408_v16 = vmul.f32 %v168_v54, %v68_v51  ;;  %v519_v21 = vmul.f32 %v507_v26, %v483_v58  ;;  %1595 = vst [vmem:[#allocation11_spill] sm:$0xff] %v1315_v60  ;;  %v1322_v26 = vld [vmem:[#allocation2 + $0x120] sm:$0xff]  ;;  %v1327_v49 = vld [vmem:[#allocation2 + $0x150] sm:$0xff] }
  0x23   :  { %v384_v22 = vmul.f32 %v372_v63, %v144_v34  ;;  %v420_v23 = vsub.f32 1.0, %v68_v51  ;;  %v504_v28 = vsub.f32 1.0, %v1303_v53  ;;  %v320_v29 = vadd.f32 %v308_v14, %v276_v62  ;;  %1596 = vst [vmem:[#allocation12_spill] sm:$0xff] %v1319_v24  ;;  %v1324_v34 = vld [vmem:[#allocation2 + $0xc0] sm:$0xff] }
  0x24   :  { %v97_v33 = vunpack.c.l.bf16 %v1308_v0  ;;  %v129_v36 = vunpack.c.l.bf16 %v1310_v5  ;;  %v141_v2 = vsub.f32 1.0, %v53_v59  ;;  %v531_v37 = vadd.f32 %v519_v21, %v495_v61  ;;  %1597 = vst [vmem:[#allocation13_spill] sm:$0xff] %v1322_v26  ;;  %v65_v57 = vld [vmem:[#allocation5 + $0x60] sm:$0xff] }
  0x25   :  { %v396_v8 = vadd.f32 %v384_v22, %v352_v15  ;;  %v432_v40 = vmul.f32 %v420_v23, %v244_v7  ;;  %v185_v43 = vunpack.c.l.bf16 %v1312_v1  ;;  %1598 = vst [vmem:[#allocation14_spill] sm:$0xff] %v1324_v34  ;;  %v468_v44 = vmul.f32 %v420_v23, %v320_v29  ;;  %v77_v15 = vld [vmem:[#allocation5 + $0xc0] sm:$0xff] }
  0x26   :  { %v109_v19 = vmul.f32 %v97_v33, %v53_v59  ;;  %v153_v46 = vmul.f32 %v141_v2, %v129_v36  ;;  %v217_v48 = vunpack.c.l.bf16 %v1315_v60  ;;  %1599 = vst [vmem:[#allocation15_spill] sm:$0xff] %v1327_v49  ;;  %1090 = vmatpush.msra.mxu2 %v531_v37  ;;  %v261_v56 = vunpack.c.l.bf16 %v1319_v24  ;;  %583 = vmatpush.msra.mxu0 %v531_v37  ;;  %v64_v36 = vld [vmem:[#allocation5 + $0x58] sm:$0xff] }
  0x27   :  { %v444_v50 = vadd.f32 %v432_v40, %v408_v16  ;;  %v456_v54 = vmul.f32 %v396_v8, %v68_v51  ;;  %v197_v55 = vmul.f32 %v185_v43, %v53_v59  ;;  %v293_v62 = vunpack.c.l.bf16 %v1322_v26  ;;  %v96_v16 = vld [vmem:[#allocation2 + $0x2c] sm:$0xf]  ;;  %v128_v51 = vld [vmem:[#allocation2 + $0xbc] sm:$0xf] }
  0x28   :  { %v165_v58 = vadd.f32 %v153_v46, %v109_v19  ;;  %v229_v61 = vmul.f32 %v217_v48, %v141_v2  ;;  %v337_v63 = vunpack.c.l.bf16 %v1324_v34  ;;  %v273_v21 = vmul.f32 %v261_v56, %v53_v59  ;;  %v184_v46 = vld [vmem:[#allocation2 + $0x5c] sm:$0xf] }
  0x29   :  { %v480_v7 = vadd.f32 %v468_v44, %v456_v54  ;;  %v492_v14 = vmul.f32 %v444_v50, %v1303_v53  ;;  %v369_v22 = vunpack.c.l.bf16 %v1327_v49  ;;  %v305_v29 = vmul.f32 %v293_v62, %v141_v2  ;;  %v216_v44 = vld [vmem:[#allocation2 + $0x8c] sm:$0xf]  ;;  %v260_v56 = vld [vmem:[#allocation2 + $0x11c] sm:$0xf] }
  0x2a   :  { %v241_v23 = vadd.f32 %v229_v61, %v197_v55  ;;  %v349_v33 = vmul.f32 %v337_v63, %v53_v59  ;;  %v107_v37 = vunpack.c.h.bf16 %v1232_v3  ;;  %v405_v43 = vmul.f32 %v165_v58, %v65_v57  ;;  %v292_v59 = vld [vmem:[#allocation2 + $0x14c] sm:$0xf] }
  0x2b   :  { %v516_v8 = vmul.f32 %v504_v28, %v480_v7  ;;  %v381_v40 = vmul.f32 %v369_v22, %v141_v2  ;;  %v417_v19 = vsub.f32 1.0, %v65_v57  ;;  %v317_v48 = vadd.f32 %v305_v29, %v273_v21  ;;  %v336_v61 = vld [vmem:[#allocation2 + $0xec] sm:$0xf]  ;;  %v368_v22 = vld [vmem:[#allocation2 + $0x17c] sm:$0xf] }
  0x2c   :  { %v501_v53 = vsub.f32 1.0, %v77_v15  ;;  %v108_v50 = vunpack.c.l.bf16 %v96_v16  ;;  %v140_v54 = vunpack.c.l.bf16 %v128_v51  ;;  %v152_v55 = vsub.f32 1.0, %v64_v36  ;;  %v76_v16 = vld [vmem:[#allocation5 + $0xb8] sm:$0xff] }
  0x2d   :  { %v528_v49 = vadd.f32 %v516_v8, %v492_v14  ;;  %v393_v34 = vadd.f32 %v381_v40, %v349_v33  ;;  %v429_v26 = vmul.f32 %v417_v19, %v241_v23  ;;  %v465_v62 = vmul.f32 %v417_v19, %v317_v48  ;;  %v88_v51 = vld [vmem:[#allocation5 + $0x118] sm:$0xff] }
  0x2e   :  { %v120_v3 = vmul.f32 %v108_v50, %v64_v36  ;;  %v196_v28 = vunpack.c.l.bf16 %v184_v46  ;;  %v228_v2 = vunpack.c.l.bf16 %v216_v44  ;;  %v164_v7 = vmul.f32 %v152_v55, %v140_v54 }
  0x2f   :  { %1091 = vmatpush.msra.mxu2 %v528_v49  ;;  %v441_v58 = vadd.f32 %v429_v26, %v405_v43  ;;  %v453_v63 = vmul.f32 %v393_v34, %v65_v57  ;;  %v272_v21 = vunpack.c.l.bf16 %v260_v56  ;;  %584 = vmatpush.msra.mxu0 %v528_v49  ;;  %v304_v23 = vunpack.c.l.bf16 %v292_v59  ;;  %v63_v26 = vld [vmem:[#allocation5 + $0x50] sm:$0xff] }
  0x30   :  { %v208_v14 = vmul.f32 %v196_v28, %v64_v36  ;;  %v240_v29 = vmul.f32 %v228_v2, %v152_v55  ;;  %v348_v33 = vunpack.c.l.bf16 %v336_v61  ;;  %v176_v24 = vadd.f32 %v164_v7, %v120_v3 }
  0x31   :  { %v477_v8 = vadd.f32 %v465_v62, %v453_v63  ;;  %v489_v40 = vmul.f32 %v441_v58, %v77_v15  ;;  %v284_v19 = vmul.f32 %v272_v21, %v64_v36  ;;  %v316_v46 = vmul.f32 %v304_v23, %v152_v55  ;;  %v1339_v15 = vld [vmem:[%s1586_s2 + $0x20] sm:$0xff]  ;;  %v87_v21 = vld [vmem:[#allocation5 + $0x110] sm:$0xff] }
  0x32   :  { %v252_v48 = vadd.f32 %v240_v29, %v208_v14  ;;  %v360_v44 = vmul.f32 %v348_v33, %v64_v36  ;;  %v380_v50 = vunpack.c.l.bf16 %v368_v22  ;;  %v416_v57 = vmul.f32 %v176_v24, %v76_v16 }
  0x33   :  { %v513_v34 = vmul.f32 %v501_v53, %v477_v8  ;;  %v428_v43 = vsub.f32 1.0, %v76_v16  ;;  %v512_v54 = vsub.f32 1.0, %v88_v51  ;;  %v328_v49 = vadd.f32 %v316_v46, %v284_v19 }
  0x34   :  { %v392_v56 = vmul.f32 %v380_v50, %v152_v55  ;;  %v119_v60 = vmul.f32 %v107_v37, %v63_v26  ;;  %v139_v28 = vunpack.c.h.bf16 %v1234_v4  ;;  %v151_v62 = vsub.f32 1.0, %v63_v26  ;;  %v75_v55 = vld [vmem:[#allocation5 + $0xb0] sm:$0xff] }
  0x35   :  { %v525_v59 = vadd.f32 %v513_v34, %v489_v40  ;;  %v440_v61 = vmul.f32 %v428_v43, %v252_v48  ;;  %v195_v36 = vunpack.c.h.bf16 %v1236_v6  ;;  %v476_v53 = vmul.f32 %v428_v43, %v328_v49 }
  0x36   :  { %v404_v3 = vadd.f32 %v392_v56, %v360_v44  ;;  %v227_v24 = vunpack.c.h.bf16 %v1241_v10  ;;  %v271_v2 = vunpack.c.h.bf16 %v1243_v11  ;;  %v163_v4 = vmul.f32 %v151_v62, %v139_v28 }
  0x37   :  { %1092 = vmatpush.msra.mxu2 %v525_v59  ;;  %v452_v37 = vadd.f32 %v440_v61, %v416_v57  ;;  %v207_v58 = vmul.f32 %v195_v36, %v63_v26  ;;  %v303_v63 = vunpack.c.h.bf16 %v1245_v12  ;;  %585 = vmatpush.msra.mxu0 %v525_v59  ;;  %v347_v14 = vunpack.c.h.bf16 %v1250_v17  ;;  %v60_v12 = vld [vmem:[#allocation5 + $0x38] sm:$0xff] }
  0x38   :  { %1045 = vmatmul.msk.f32.vlgmr.msra.gmra.mxu2 %vm545_vm0, %v1339_v15  ;;  %v464_v7 = vmul.f32 %v404_v3, %v76_v16  ;;  %v239_v6 = vmul.f32 %v227_v24, %v151_v62  ;;  %v283_v22 = vmul.f32 %v271_v2, %v63_v26  ;;  %v175_v29 = vadd.f32 %v163_v4, %v119_v60  ;;  %v1354_v60 = vld [vmem:[%s1586_s2 + $0x28] sm:$0xff]  ;;  %v72_v61 = vld [vmem:[#allocation5 + $0x98] sm:$0xff]  ;;  %v94_v4 = vld [vmem:[#allocation2 + $0x20] sm:$0xf] }
  0x39   :  { %v500_v10 = vmul.f32 %v452_v37, %v88_v51  ;;  %v315_v11 = vmul.f32 %v303_v63, %v151_v62  ;;  %v379_v23 = vunpack.c.h.bf16 %v1252_v18  ;;  %v359_v40 = vmul.f32 %v347_v14, %v63_v26  ;;  %v84_v3 = vld [vmem:[#allocation5 + $0xf8] sm:$0xff] }
  0x3a   :  { %v488_v33 = vadd.f32 %v476_v53, %v464_v7  ;;  %v251_v8 = vadd.f32 %v239_v6, %v207_v58  ;;  %v427_v19 = vsub.f32 1.0, %v75_v55  ;;  %v415_v44 = vmul.f32 %v175_v29, %v75_v55  ;;  %v126_v58 = vld [vmem:[#allocation2 + $0xb0] sm:$0xf] }
  0x3b   :  { %v327_v48 = vadd.f32 %v315_v11, %v283_v22  ;;  %v391_v46 = vmul.f32 %v379_v23, %v151_v62  ;;  %v511_v50 = vsub.f32 1.0, %v87_v21  ;;  %v104_v57 = vunpack.c.h.bf16 %v1256_v25  ;;  %v61_v22 = vld [vmem:[#allocation5 + $0x40] sm:$0xff] }
  0x3c   :  { %v524_v16 = vmul.f32 %v512_v54, %v488_v33  ;;  %v439_v34 = vmul.f32 %v427_v19, %v251_v8  ;;  %v136_v17 = vunpack.c.h.bf16 %v1259_v30  ;;  %v148_v26 = vsub.f32 1.0, %v60_v12  ;;  %v214_v11 = vld [vmem:[#allocation2 + $0x80] sm:$0xf] }
  0x3d   :  { %v403_v18 = vadd.f32 %v391_v46, %v359_v40  ;;  %v475_v51 = vmul.f32 %v427_v19, %v327_v48  ;;  %v192_v43 = vunpack.c.h.bf16 %v1261_v31  ;;  %v116_v28 = vmul.f32 %v104_v57, %v60_v12  ;;  %v258_v40 = vld [vmem:[#allocation2 + $0x110] sm:$0xf] }
  0x3e   :  { %v536_v49 = vadd.f32 %v524_v16, %v500_v10  ;;  %v451_v56 = vadd.f32 %v439_v34, %v415_v44  ;;  %v224_v54 = vunpack.c.h.bf16 %v1263_v32  ;;  %v160_v25 = vmul.f32 %v148_v26, %v136_v17  ;;  %v290_v44 = vld [vmem:[#allocation2 + $0x140] sm:$0xf] }
  0x3f   :  { %v463_v59 = vmul.f32 %v403_v18, %v75_v55  ;;  %v204_v62 = vmul.f32 %v192_v43, %v60_v12  ;;  %v268_v30 = vunpack.c.h.bf16 %v1267_v41  ;;  %v300_v24 = vunpack.c.h.bf16 %v1269_v42  ;;  %v366_v18 = vld [vmem:[#allocation2 + $0x170] sm:$0xf] }
  0x40   :  { %1046 = vmatmul.msk.f32.gmra.mxu2 %vm545_vm0, %v1354_v60  ;;  %v499_v36 = vmul.f32 %v451_v56, %v87_v21  ;;  %v236_v53 = vmul.f32 %v224_v54, %v148_v26  ;;  %v344_v31 = vunpack.c.h.bf16 %v1273_v47  ;;  %v172_v37 = vadd.f32 %v160_v25, %v116_v28  ;;  %v182_v21 = vld [vmem:[#allocation2 + $0x50] sm:$0xf]  ;;  %v85_v54 = vld [vmem:[#allocation5 + $0x100] sm:$0xff] }
  0x41   :  { %664 = vmatpush.msrb.mxu2 %v536_v49  ;;  %v487_v2 = vadd.f32 %v475_v51, %v463_v59  ;;  %v280_v32 = vmul.f32 %v268_v30, %v60_v12  ;;  %v376_v55 = vunpack.c.h.bf16 %v1275_v52  ;;  %v312_v41 = vmul.f32 %v300_v24, %v148_v26  ;;  %v1367_v52 = vld [vmem:[%s1586_s2 + $0x30] sm:$0xff] }
  0x42   :  { %v248_v63 = vadd.f32 %v236_v53, %v204_v62  ;;  %v356_v7 = vmul.f32 %v344_v31, %v60_v12  ;;  %v424_v6 = vsub.f32 1.0, %v72_v61  ;;  %v412_v29 = vmul.f32 %v172_v37, %v72_v61 }
  0x43   :  { %v523_v14 = vmul.f32 %v511_v50, %v487_v2  ;;  %v388_v10 = vmul.f32 %v376_v55, %v148_v26  ;;  %v508_v42 = vsub.f32 1.0, %v84_v3  ;;  %v324_v47 = vadd.f32 %v312_v41, %v280_v32  ;;  %v334_v50 = vld [vmem:[#allocation2 + $0xe0] sm:$0xf] }
  0x44   :  { %v436_v23 = vmul.f32 %v424_v6, %v248_v63  ;;  %v105_v33 = vunpack.c.l.bf16 %v94_v4  ;;  %v137_v8 = vunpack.c.l.bf16 %v126_v58  ;;  %v149_v48 = vsub.f32 1.0, %v61_v22  ;;  %v73_v26 = vld [vmem:[#allocation5 + $0xa0] sm:$0xff] }
  0x45   :  { %v535_v19 = vadd.f32 %v523_v14, %v499_v36  ;;  %v400_v12 = vadd.f32 %v388_v10, %v356_v7  ;;  %v193_v46 = vunpack.c.l.bf16 %v182_v21  ;;  %v472_v34 = vmul.f32 %v424_v6, %v324_v47  ;;  %v57_v32 = vld [vmem:[#allocation5 + $0x20] sm:$0xff]  ;;  %v1376_v21 = vld [vmem:[%s1586_s2 + $0x38] sm:$0xff] }
  0x46   :  { %v448_v16 = vadd.f32 %v436_v23, %v412_v29  ;;  %v117_v57 = vmul.f32 %v105_v33, %v61_v22  ;;  %v225_v17 = vunpack.c.l.bf16 %v214_v11  ;;  %v161_v43 = vmul.f32 %v149_v48, %v137_v8 }
  0x47   :  { %1093 = vmatpush.msra.mxu3 %v535_v19  ;;  %v460_v51 = vmul.f32 %v400_v12, %v72_v61  ;;  %v205_v49 = vmul.f32 %v193_v46, %v61_v22  ;;  %v269_v56 = vunpack.c.l.bf16 %v258_v40  ;;  %623 = vmatpush.msra.mxu1 %v535_v19  ;;  %v301_v25 = vunpack.c.l.bf16 %v290_v44  ;;  %v81_v12 = vld [vmem:[#allocation5 + $0xe0] sm:$0xff] }
  0x48   :  { %1047 = vmatmul.msk.f32.gmra.mxu2 %vm545_vm0, %v1367_v52  ;;  %v496_v28 = vmul.f32 %v448_v16, %v84_v3  ;;  %v237_v59 = vmul.f32 %v225_v17, %v149_v48  ;;  %v345_v62 = vunpack.c.l.bf16 %v334_v50  ;;  %v173_v36 = vadd.f32 %v161_v43, %v117_v57 }
  0x49   :  { %v484_v30 = vadd.f32 %v472_v34, %v460_v51  ;;  %v281_v53 = vmul.f32 %v269_v56, %v61_v22  ;;  %v377_v24 = vunpack.c.l.bf16 %v366_v18  ;;  %v313_v2 = vmul.f32 %v301_v25, %v149_v48  ;;  %v54_v51 = vld [vmem:[#allocation5 + $0x8] sm:$0xff] }
  0x4a   :  { %v249_v31 = vadd.f32 %v237_v59, %v205_v49  ;;  %v357_v61 = vmul.f32 %v345_v62, %v61_v22  ;;  %v425_v37 = vsub.f32 1.0, %v73_v26  ;;  %v413_v58 = vmul.f32 %v173_v36, %v73_v26 }
  0x4b   :  { %v520_v55 = vmul.f32 %v508_v42, %v484_v30  ;;  %v389_v4 = vmul.f32 %v377_v24, %v149_v48  ;;  %v509_v63 = vsub.f32 1.0, %v85_v54  ;;  %v325_v41 = vadd.f32 %v313_v2, %v281_v53  ;;  %v1600_v24 = vld [vmem:[#allocation11_spill] sm:$0xff] }
  0x4c   :  { %v437_v7 = vmul.f32 %v425_v37, %v249_v31  ;;  %v101_v3 = vunpack.c.h.bf16 %v1281_v9  ;;  %v133_v6 = vunpack.c.h.bf16 %v1283_v13  ;;  %v145_v22 = vsub.f32 1.0, %v57_v32  ;;  %v69_v9 = vld [vmem:[#allocation5 + $0x80] sm:$0xff] }
  0x4d   :  { %v532_v14 = vadd.f32 %v520_v55, %v496_v28  ;;  %v401_v10 = vadd.f32 %v389_v4, %v357_v61  ;;  %v189_v29 = vunpack.c.h.bf16 %v1286_v20  ;;  %v473_v11 = vmul.f32 %v425_v37, %v325_v41  ;;  %v66_v61 = vld [vmem:[#allocation5 + $0x68] sm:$0xff] }
  0x4e   :  { %v449_v42 = vadd.f32 %v437_v7, %v413_v58  ;;  %v113_v47 = vmul.f32 %v101_v3, %v57_v32  ;;  %v221_v23 = vunpack.c.h.bf16 %v1288_v27  ;;  %v157_v8 = vmul.f32 %v145_v22, %v133_v6  ;;  %v1601_v55 = vld [vmem:[#allocation12_spill] sm:$0xff]  ;;  %v1603_v7 = vld [vmem:[#allocation14_spill] sm:$0xff] }
  0x4f   :  { %1094 = vmatpush.msra.mxu3 %v532_v14  ;;  %v461_v33 = vmul.f32 %v401_v10, %v73_v26  ;;  %v201_v13 = vmul.f32 %v189_v29, %v57_v32  ;;  %v265_v40 = vunpack.c.h.bf16 %v1292_v35  ;;  %624 = vmatpush.msra.mxu1 %v532_v14  ;;  %v297_v20 = vunpack.c.h.bf16 %v1295_v38  ;;  %v1389_v35 = vld [vmem:[%s1586_s2] sm:$0xff]  ;;  %v1398_v58 = vld [vmem:[#allocation5 + $0xc8] sm:$0xff] }
  0x50   :  { %1048 = vmatmul.msk.f32.gmra.mxu2 %vm545_vm0, %v1376_v21  ;;  %v497_v19 = vmul.f32 %v449_v42, %v85_v54  ;;  %v233_v48 = vmul.f32 %v221_v23, %v145_v22  ;;  %v341_v46 = vunpack.c.h.bf16 %v1297_v39  ;;  %v169_v27 = vadd.f32 %v157_v8, %v113_v47  ;;  %1041 = vmatmul.msk.f32.vlgmr.msra.gmra.mxu0 %vm545_vm0, %v1389_v35  ;;  %v1405_v3 = vld [vmem:[%s1586_s2 + $0x8] sm:$0xff]  ;;  %v92_v42 = vld [vmem:[#allocation2 + $0x14] sm:$0xf] }
  0x51   :  { %v485_v44 = vadd.f32 %v473_v11, %v461_v33  ;;  %v277_v50 = vmul.f32 %v265_v40, %v57_v32  ;;  %v373_v16 = vunpack.c.h.bf16 %v1300_v45  ;;  %v309_v57 = vmul.f32 %v297_v20, %v145_v22  ;;  %v124_v11 = vld [vmem:[#allocation2 + $0xa4] sm:$0xf]  ;;  %v58_v8 = vld [vmem:[#allocation5 + $0x28] sm:$0xff]  ;;  %v212_v20 = vld [vmem:[#allocation2 + $0x74] sm:$0xf] }
  0x52   :  { %v245_v34 = vadd.f32 %v233_v48, %v201_v13  ;;  %v353_v17 = vmul.f32 %v341_v46, %v57_v32  ;;  %v421_v18 = vsub.f32 1.0, %v69_v9  ;;  %v409_v26 = vmul.f32 %v169_v27, %v69_v9  ;;  %v180_v13 = vld [vmem:[#allocation2 + $0x44] sm:$0xf] }
  0x53   :  { %v521_v38 = vmul.f32 %v509_v63, %v485_v44  ;;  %v385_v39 = vmul.f32 %v373_v16, %v145_v22  ;;  %v505_v43 = vsub.f32 1.0, %v81_v12  ;;  %v321_v49 = vadd.f32 %v309_v57, %v277_v50  ;;  %v1602_v63 = vld [vmem:[#allocation13_spill] sm:$0xff]  ;;  %v1604_v22 = vld [vmem:[#allocation15_spill] sm:$0xff] }
  0x54   :  { %v433_v56 = vmul.f32 %v421_v18, %v245_v34  ;;  %v98_v45 = vunpack.c.h.bf16 %v1308_v0  ;;  %v130_v28 = vunpack.c.h.bf16 %v1310_v5  ;;  %v142_v25 = vsub.f32 1.0, %v54_v51  ;;  %v256_v16 = vld [vmem:[#allocation2 + $0x104] sm:$0xf] }
  0x55   :  { %v533_v54 = vadd.f32 %v521_v38, %v497_v19  ;;  %v397_v59 = vadd.f32 %v385_v39, %v353_v17  ;;  %v186_v62 = vunpack.c.h.bf16 %v1312_v1  ;;  %v469_v36 = vmul.f32 %v421_v18, %v321_v49  ;;  %v332_v38 = vld [vmem:[#allocation2 + $0xd4] sm:$0xf] }
  0x56   :  { %v445_v30 = vadd.f32 %v433_v56, %v409_v26  ;;  %v110_v53 = vmul.f32 %v98_v45, %v54_v51  ;;  %v218_v31 = vunpack.c.h.bf16 %v1600_v24  ;;  %v154_v37 = vmul.f32 %v142_v25, %v130_v28  ;;  %v364_v56 = vld [vmem:[#allocation2 + $0x164] sm:$0xf]  ;;  %v70_v28 = vld [vmem:[#allocation5 + $0x88] sm:$0xff] }
  0x57   :  { %665 = vmatpush.msrb.mxu2 %v533_v54  ;;  %v457_v2 = vmul.f32 %v397_v59, %v69_v9  ;;  %v198_v32 = vmul.f32 %v186_v62, %v54_v51  ;;  %v262_v4 = vunpack.c.h.bf16 %v1601_v55  ;;  %v294_v41 = vunpack.c.h.bf16 %v1602_v63  ;;  %v90_v55 = vld [vmem:[#allocation2 + $0x8] sm:$0xf] }
  0x58   :  { %v493_v0 = vmul.f32 %v445_v30, %v81_v12  ;;  %v230_v5 = vmul.f32 %v218_v31, %v142_v25  ;;  %v338_v1 = vunpack.c.h.bf16 %v1603_v7  ;;  %v166_v14 = vadd.f32 %v154_v37, %v110_v53  ;;  %1042 = vmatmul.msk.f32.gmra.mxu0 %vm545_vm0, %v1405_v3  ;;  %v1412_v30 = vld [vmem:[#allocation5 + $0xe8] sm:$0xff]  ;;  %v1417_v31 = vld [vmem:[%s1586_s2 + $0x10] sm:$0xff]  ;;  %v178_v7 = vld [vmem:[#allocation2 + $0x38] sm:$0xf] }
  0x59   :  { %v481_v6 = vadd.f32 %v469_v36, %v457_v2  ;;  %v274_v10 = vmul.f32 %v262_v4, %v54_v51  ;;  %v370_v29 = vunpack.c.h.bf16 %v1604_v22  ;;  %v306_v23 = vmul.f32 %v294_v41, %v142_v25  ;;  %v122_v4 = vld [vmem:[#allocation2 + $0x98] sm:$0xf]  ;;  %v55_v41 = vld [vmem:[#allocation5 + $0x10] sm:$0xff]  ;;  %v210_v22 = vld [vmem:[#allocation2 + $0x68] sm:$0xf] }
  0x5a   :  { %v242_v47 = vadd.f32 %v230_v5, %v198_v32  ;;  %v350_v33 = vmul.f32 %v338_v1, %v54_v51  ;;  %v418_v9 = vsub.f32 1.0, %v66_v61  ;;  %v406_v12 = vmul.f32 %v166_v14, %v66_v61  ;;  %v288_v51 = vld [vmem:[#allocation2 + $0x134] sm:$0xf] }
  0x5b   :  { %v517_v40 = vmul.f32 %v505_v43, %v481_v6  ;;  %v382_v19 = vmul.f32 %v370_v29, %v142_v25  ;;  %v502_v48 = vsub.f32 1.0, %v1398_v58  ;;  %v318_v46 = vadd.f32 %v306_v23, %v274_v10  ;;  %v254_v23 = vld [vmem:[#allocation2 + $0xf8] sm:$0xf] }
  0x5c   :  { %v430_v44 = vmul.f32 %v418_v9, %v242_v47  ;;  %v102_v27 = vunpack.c.l.bf16 %v92_v42  ;;  %v134_v50 = vunpack.c.l.bf16 %v124_v11  ;;  %v146_v17 = vsub.f32 1.0, %v58_v8 }
  0x5d   :  { %v529_v34 = vadd.f32 %v517_v40, %v493_v0  ;;  %v394_v57 = vadd.f32 %v382_v19, %v350_v33  ;;  %v190_v18 = vunpack.c.l.bf16 %v180_v13  ;;  %v466_v26 = vmul.f32 %v418_v9, %v318_v46  ;;  %v286_v40 = vld [vmem:[#allocation2 + $0x128] sm:$0xf] }
  0x5e   :  { %v442_v39 = vadd.f32 %v430_v44, %v406_v12  ;;  %v114_v49 = vmul.f32 %v102_v27, %v58_v8  ;;  %v222_v43 = vunpack.c.l.bf16 %v212_v20  ;;  %v158_v54 = vmul.f32 %v146_v17, %v134_v50  ;;  %v330_v19 = vld [vmem:[#allocation2 + $0xc8] sm:$0xf]  ;;  %v362_v44 = vld [vmem:[#allocation2 + $0x158] sm:$0xf]  ;;  %v67_v50 = vld [vmem:[#allocation5 + $0x70] sm:$0xff] }
  0x5f   :  { %1095 = vmatpush.msra.mxu3 %v529_v34  ;;  %v454_v45 = vmul.f32 %v394_v57, %v66_v61  ;;  %v202_v59 = vmul.f32 %v190_v18, %v58_v8  ;;  %v266_v25 = vunpack.c.l.bf16 %v256_v16  ;;  %625 = vmatpush.msra.mxu1 %v529_v34  ;;  %v298_v53 = vunpack.c.l.bf16 %v288_v51 }
  0x60   :  { %v490_v62 = vmul.f32 %v442_v39, %v1398_v58  ;;  %v234_v36 = vmul.f32 %v222_v43, %v146_v17  ;;  %v342_v24 = vunpack.c.l.bf16 %v332_v38  ;;  %v170_v37 = vadd.f32 %v158_v54, %v114_v49  ;;  %1043 = vmatmul.msk.f32.gmra.mxu0 %vm545_vm0, %v1417_v31  ;;  %v540_v39 = vld [vmem:[%s1586_s2 + $0x18] sm:$0xff] }
  0x61   :  { %v478_v2 = vadd.f32 %v466_v26, %v454_v45  ;;  %v278_v61 = vmul.f32 %v266_v25, %v58_v8  ;;  %v374_v32 = vunpack.c.l.bf16 %v364_v56  ;;  %v310_v5 = vmul.f32 %v298_v53, %v146_v17 }
  0x62   :  { %v246_v0 = vadd.f32 %v234_v36, %v202_v59  ;;  %v354_v63 = vmul.f32 %v342_v24, %v58_v8  ;;  %v422_v58 = vsub.f32 1.0, %v70_v28  ;;  %v410_v14 = vmul.f32 %v170_v37, %v70_v28  ;;  %v79_v36 = vld [vmem:[#allocation5 + $0xd0] sm:$0xff] }
  0x63   :  { %v514_v1 = vmul.f32 %v502_v48, %v478_v2  ;;  %v386_v6 = vmul.f32 %v374_v32, %v146_v17  ;;  %v506_v10 = vsub.f32 1.0, %v1412_v30  ;;  %v322_v29 = vadd.f32 %v310_v5, %v278_v61 }
  0x64   :  { %v434_v42 = vmul.f32 %v422_v58, %v246_v0  ;;  %v99_v11 = vunpack.c.l.bf16 %v90_v55  ;;  %v131_v47 = vunpack.c.l.bf16 %v122_v4  ;;  %v143_v8 = vsub.f32 1.0, %v55_v41 }
  0x65   :  { %v526_v33 = vadd.f32 %v514_v1, %v490_v62  ;;  %v398_v9 = vadd.f32 %v386_v6, %v354_v63  ;;  %v187_v13 = vunpack.c.l.bf16 %v178_v7  ;;  %v470_v20 = vmul.f32 %v422_v58, %v322_v29 }
  0x66   :  { %v446_v12 = vadd.f32 %v434_v42, %v410_v14  ;;  %v111_v46 = vmul.f32 %v99_v11, %v55_v41  ;;  %v219_v48 = vunpack.c.l.bf16 %v210_v22  ;;  %v155_v16 = vmul.f32 %v143_v8, %v131_v47 }
  0x67   :  { %1096 = vmatpush.msra.mxu3 %v526_v33  ;;  %v458_v27 = vmul.f32 %v398_v9, %v70_v28  ;;  %v199_v34 = vmul.f32 %v187_v13, %v55_v41  ;;  %v263_v57 = vunpack.c.l.bf16 %v254_v23  ;;  %626 = vmatpush.msra.mxu1 %v526_v33  ;;  %v295_v51 = vunpack.c.l.bf16 %v286_v40  ;;  %v1460_v23 = vld [vmem:[%s1587_s3] sm:$0xff] }
  0x68   :  { %v494_v17 = vmul.f32 %v446_v12, %v1412_v30  ;;  %1053 = vmatmul.msk.f32.vlgmr.msra.gmra.mxu3 %vm545_vm0, %v1339_v15  ;;  %v231_v18 = vmul.f32 %v219_v48, %v143_v8  ;;  %v339_v38 = vunpack.c.l.bf16 %v330_v19  ;;  %1049 = vmatmul.msk.f32.vlgmr.msra.gmra.mxu1 %vm545_vm0, %v1389_v35  ;;  %v167_v49 = vadd.f32 %v155_v16, %v111_v46  ;;  %v1476_v12 = vld [vmem:[%s1587_s3 + $0x10] sm:$0xff] }
  0x69   :  { %v482_v26 = vadd.f32 %v470_v20, %v458_v27  ;;  %v275_v43 = vmul.f32 %v263_v57, %v55_v41  ;;  %v371_v56 = vunpack.c.l.bf16 %v362_v44  ;;  %v307_v28 = vmul.f32 %v295_v51, %v143_v8  ;;  %1044 = vmatmul.msk.f32.gmra.mxu0 %vm545_vm0, %v540_v39 }
  0x6a   :  { %v243_v45 = vadd.f32 %v231_v18, %v199_v34  ;;  %v351_v54 = vmul.f32 %v339_v38, %v55_v41  ;;  %v419_v59 = vsub.f32 1.0, %v67_v50  ;;  %v407_v30 = vmul.f32 %v167_v49, %v67_v50  ;;  %v1485_v34 = vld [vmem:[%s1587_s3 + $0x18] sm:$0xff]  ;;  %v722_v49 = vld [vmem:[%s1587_s3 + $0x28] sm:$0xff] }
  0x6b   :  { %v518_v25 = vmul.f32 %v506_v10, %v482_v26  ;;  %v383_v62 = vmul.f32 %v371_v56, %v143_v8  ;;  %v319_v53 = vadd.f32 %v307_v28, %v275_v43  ;;  %v503_v4 = vsub.f32 1.0, %v79_v36  ;;  %v1467_v8 = vld [vmem:[%s1587_s3 + $0x8] sm:$0xff]  ;;  %v723_v56 = vld [vmem:[%s1587_s3 + $0x30] sm:$0xff] }
  0x6c   :  { %v431_v24 = vmul.f32 %v419_v59, %v243_v45  ;;  %v1192_v28 = vmov 0  }
  0x6d   :  { %v530_v2 = vadd.f32 %v518_v25, %v494_v17  ;;  %v395_v37 = vadd.f32 %v383_v62, %v351_v54  ;;  %v467_v32 = vmul.f32 %v419_v59, %v319_v53  ;;  %1105 = vset.pattern.permute.xlu0 %v1192_v28  ;;  %v897_v54 = vld [vmem:[%s1588_s4] sm:$0xff]  ;;  %1106 = vset.pattern.permute.xlu1 %v1192_v28  ;;  %v724_v59 = vld [vmem:[%s1587_s3 + $0x38] sm:$0xff]  ;;  %v899_v25 = vld [vmem:[%s1588_s4 + $0x10] sm:$0xff] }
  0x6e   :  { %v443_v61 = vadd.f32 %v431_v24, %v407_v30  ;;  %907 = vperm.xlu0 %1105, %v897_v54   ;;  %1107 = vset.pattern.permute.xlu2 %v1192_v28  ;;  %v898_v30 = vld [vmem:[%s1588_s4 + $0x8] sm:$0xff] }
  0x6f   :  { %666 = vmatpush.msrb.mxu2 %v530_v2  ;;  %v455_v55 = vmul.f32 %v395_v37, %v67_v50  ;;  %917 = vperm.xlu1 %1106, %v899_v25   ;;  %v903_v37 = vld [vmem:[%s1588_s4 + $0x30] sm:$0xff] }
  0x70   :  { %1054 = vmatmul.msk.f32.gmra.mxu3 %vm545_vm0, %v1354_v60  ;;  %1050 = vmatmul.msk.f32.gmra.mxu1 %vm545_vm0, %v1405_v3  ;;  %v491_v5 = vmul.f32 %v443_v61, %v79_v36  ;;  %v900_v36 = vld [vmem:[%s1588_s4 + $0x18] sm:$0xff] }
  0x71   :  { %v479_v0 = vadd.f32 %v467_v32, %v455_v55  ;;  %v904_v32 = vld [vmem:[%s1588_s4 + $0x38] sm:$0xff] }
  0x73   :  { %v515_v63 = vmul.f32 %v503_v4, %v479_v0 }
  0x75   :  { %v527_v58 = vadd.f32 %v515_v63, %v491_v5 }
  0x76   :  { %912 = vperm.xlu0 %1105, %v898_v30  }
  0x77   :  { %667 = vmatpush.msrb.mxu2 %v527_v58  ;;  %922 = vperm.xlu1 %1106, %v900_v36   ;;  %v901_v58 = vld [vmem:[%s1588_s4 + $0x20] sm:$0xff] }
  0x78   :  { %1057 = vmatmul.msk.f32.vlgmr.msrb.gmra.mxu2 %vm545_vm0, %v1389_v35  ;;  %1055 = vmatmul.msk.f32.gmra.mxu3 %vm545_vm0, %v1367_v52 }
  0x79   :  { %1051 = vmatmul.msk.f32.gmra.mxu1 %vm545_vm0, %v1417_v31  ;;  %927 = vperm.xlu2 %1107, %v901_v58  }
  0x7e   :  { %937 = vperm.xlu0 %1105, %v903_v37  }
  0x7f   :  { %942 = vperm.xlu1 %1106, %v904_v32  }
  0x80   :  { %1058 = vmatmul.msk.f32.gmra.mxu2 %vm545_vm0, %v1405_v3  ;;  %1056 = vmatmul.msk.f32.gmra.mxu3 %vm545_vm0, %v1376_v21 }
  0x81   :  { %1052 = vmatmul.msk.f32.gmra.mxu1 %vm545_vm0, %v540_v39 }
  0x88   :  { %1059 = vmatmul.msk.f32.gmra.mxu2 %vm545_vm0, %v1417_v31 }
  0x90   :  { %1060 = vmatmul.msk.f32.gmra.mxu2 %vm545_vm0, %v540_v39  ;;  %v1492_v39 = vld [vmem:[%s1587_s3 + $0x20] sm:$0xff] }
  0x98   :  { %1061 = vmatmul.msk.f32.gmra.mxu2 %vm545_vm0, %v1339_v15 }
  0xa0   :  { %1062 = vmatmul.msk.f32.gmra.mxu2 %vm545_vm0, %v1354_v60 }
  0xa8   :  { %1063 = vmatmul.msk.f32.gmra.mxu2 %vm545_vm0, %v1367_v52 }
  0xb0   :  { %1064 = vmatmul.msk.f32.gmra.mxu2 %vm545_vm0, %v1376_v21 }
  0xbb   :  { %v599_v35 = vpop.f32.mrf.mxu2 }
  0xbc   :  { %v705_v15 = vmax.f32 %v599_v35, 0.0  ;;  %v902_v35 = vld [vmem:[%s1588_s4 + $0x28] sm:$0xff]  ;;  %s1193_s4 = smov [#allocation7]  }
  0xbd   :  { %932 = vperm.xlu2 %1107, %v902_v35   ;;  %s1028_s23 = sshll.u32 %s1193_s4, 4  ;;  %s1029_s23 = int_to_ptr.vmem [resolvable:$true] %s1028_s23 }
  0xc3   :  { %v602_v3 = vpop.f32.mrf.mxu2 }
  0xc4   :  { %v708_v10 = vmax.f32 %v602_v3, 0.0 }
  0xcb   :  { %v605_v41 = vpop.f32.mrf.mxu2 }
  0xcc   :  { %v711_v6 = vmax.f32 %v605_v41, 0.0 }
  0xcd   :  { %v587_v7 = vpop.f32.mrf.mxu0 }
  0xce   :  { %v693_v47 = vmax.f32 %v587_v7, 0.0 }
  0xd3   :  { %v608_v1 = vpop.f32.mrf.mxu2 }
  0xd4   :  { %v714_v31 = vmax.f32 %v608_v1, 0.0 }
  0xd5   :  { %v590_v14 = vpop.f32.mrf.mxu0 }
  0xd6   :  { %758 = vmatpush.msrb.mxu3 %v714_v31  ;;  %v696_v42 = vmax.f32 %v590_v14, 0.0 }
  0xd8   :  { %759 = vmatpush.msrb.mxu3 %v711_v6 }
  0xda   :  { %760 = vmatpush.msrb.mxu3 %v708_v10 }
  0xdc   :  { %761 = vmatpush.msrb.mxu3 %v705_v15 }
  0xdd   :  { %v593_v60 = vpop.f32.mrf.mxu0 }
  0xde   :  { %v699_v21 = vmax.f32 %v593_v60, 0.0 }
  0xe5   :  { %v628_v29 = vpop.f32.mrf.mxu1 }
  0xe6   :  { %v596_v22 = vpop.f32.mrf.mxu0  ;;  %v694_v38 = vmax.f32 %v628_v29, 0.0 }
  0xe7   :  { %v702_v52 = vmax.f32 %v596_v22, 0.0  ;;  %v1562_v22 = vpop.permute.xlu0 %907 }
  0xe9   :  { %762 = vmatpush.msrb.mxu3 %v702_v52 }
  0xeb   :  { %v640_v11 = vpop.f32.mrf.mxu3  ;;  %763 = vmatpush.msrb.mxu3 %v699_v21 }
  0xec   :  { %v706_v16 = vmax.f32 %v640_v11, 0.0 }
  0xed   :  { %764 = vmatpush.msrb.mxu3 %v696_v42  ;;  %v631_v9 = vpop.f32.mrf.mxu1  ;;  %v1566_v42 = vpop.permute.xlu1 %917 }
  0xee   :  { %v697_v51 = vmax.f32 %v631_v9, 0.0 }
  0xef   :  { %765 = vmatpush.msrb.mxu3 %v693_v47 }
  0xf0   :  { %1065 = vmatmul.msk.f32.vlgmr.msrb.gmra.mxu3 %vm725_vm1, %v1460_v23 }
  0xf3   :  { %v643_v33 = vpop.f32.mrf.mxu3 }
  0xf4   :  { %v709_v27 = vmax.f32 %v643_v33, 0.0 }
  0xf6   :  { %v634_v19 = vpop.f32.mrf.mxu1 }
  0xf7   :  { %v700_v18 = vmax.f32 %v634_v19, 0.0 }
  0xf8   :  { %1066 = vmatmul.msk.f32.gmra.mxu3 %vm725_vm1, %v1467_v8 }
  0xfb   :  { %v1471_v13 = vpop.f32.mrf.mxu2  ;;  %v646_v40 = vpop.f32.mrf.mxu3 }
  0xfc   :  { %v712_v48 = vmax.f32 %v646_v40, 0.0  ;;  %v695_v63 = vmax.f32 %v1471_v13, 0.0 }
  0xfe   :  { %v637_v50 = vpop.f32.mrf.mxu1 }
  0xff   :  { %v703_v57 = vmax.f32 %v637_v50, 0.0 }
 0x100   :  { %1067 = vmatmul.msk.f32.gmra.mxu3 %vm725_vm1, %v1476_v12 }
 0x103   :  { %v1480_v20 = vpop.f32.mrf.mxu2  ;;  %v649_v46 = vpop.f32.mrf.mxu3 }
 0x104   :  { %v715_v44 = vmax.f32 %v649_v46, 0.0  ;;  %v698_v5 = vmax.f32 %v1480_v20, 0.0 }
 0x106   :  { %799 = vmatpush.msrb.mxu0 %v715_v44 }
 0x108   :  { %800 = vmatpush.msrb.mxu0 %v712_v48  ;;  %1068 = vmatmul.msk.f32.gmra.mxu3 %vm725_vm1, %v1485_v34  ;;  %v1570_v48 = vpop.permute.xlu2 %927 }
 0x10a   :  { %801 = vmatpush.msrb.mxu0 %v709_v27 }
 0x10b   :  { %v675_v17 = vpop.f32.mrf.mxu2 }
 0x10c   :  { %802 = vmatpush.msrb.mxu0 %v706_v16  ;;  %v701_v0 = vmax.f32 %v675_v17, 0.0 }
 0x10e   :  { %803 = vmatpush.msrb.mxu0 %v703_v57 }
 0x110   :  { %804 = vmatpush.msrb.mxu0 %v700_v18  ;;  %1069 = vmatmul.msk.f32.gmra.mxu3 %vm725_vm1, %v1492_v39 }
 0x112   :  { %805 = vmatpush.msrb.mxu0 %v697_v51 }
 0x113   :  { %v678_v26 = vpop.f32.mrf.mxu2 }
 0x114   :  { %806 = vmatpush.msrb.mxu0 %v694_v38  ;;  %v704_v4 = vmax.f32 %v678_v26, 0.0 }
 0x115   :  { %1073 = vmatmul.msk.f32.vlgmr.msrb.gmra.mxu0 %vm725_vm1, %v1460_v23 }
 0x118   :  { %1070 = vmatmul.msk.f32.gmra.mxu3 %vm725_vm1, %v722_v49 }
 0x11b   :  { %v681_v43 = vpop.f32.mrf.mxu2 }
 0x11c   :  { %v707_v55 = vmax.f32 %v681_v43, 0.0 }
 0x11d   :  { %1074 = vmatmul.msk.f32.gmra.mxu0 %vm725_vm1, %v1467_v8 }
 0x120   :  { %1071 = vmatmul.msk.f32.gmra.mxu3 %vm725_vm1, %v723_v56 }
 0x123   :  { %v684_v45 = vpop.f32.mrf.mxu2 }
 0x124   :  { %v710_v61 = vmax.f32 %v684_v45, 0.0 }
 0x125   :  { %1075 = vmatmul.msk.f32.gmra.mxu0 %vm725_vm1, %v1476_v12 }
 0x128   :  { %1072 = vmatmul.msk.f32.gmra.mxu3 %vm725_vm1, %v724_v59 }
 0x12b   :  { %v687_v62 = vpop.f32.mrf.mxu2 }
 0x12c   :  { %v713_v2 = vmax.f32 %v687_v62, 0.0  ;;  %v933_v62 = vpop.permute.xlu2 %932 }
 0x12d   :  { %1076 = vmatmul.msk.f32.gmra.mxu0 %vm725_vm1, %v1485_v34 }
 0x133   :  { %v690_v53 = vpop.f32.mrf.mxu2 }
 0x134   :  { %v716_v24 = vmax.f32 %v690_v53, 0.0 }
 0x135   :  { %1077 = vmatmul.msk.f32.gmra.mxu0 %vm725_vm1, %v1492_v39 }
 0x136   :  { %840 = vmatpush.msrb.mxu1 %v716_v24 }
 0x138   :  { %841 = vmatpush.msrb.mxu1 %v713_v2 }
 0x13a   :  { %842 = vmatpush.msrb.mxu1 %v710_v61 }
 0x13c   :  { %843 = vmatpush.msrb.mxu1 %v707_v55 }
 0x13d   :  { %1078 = vmatmul.msk.f32.gmra.mxu0 %vm725_vm1, %v722_v49 }
 0x13e   :  { %844 = vmatpush.msrb.mxu1 %v704_v4 }
 0x140   :  { %845 = vmatpush.msrb.mxu1 %v701_v0 }
 0x142   :  { %846 = vmatpush.msrb.mxu1 %v698_v5 }
 0x144   :  { %847 = vmatpush.msrb.mxu1 %v695_v63 }
 0x145   :  { %1081 = vmatmul.msk.f32.vlgmr.msrb.gmra.mxu1 %vm725_vm1, %v1460_v23  ;;  %1079 = vmatmul.msk.f32.gmra.mxu0 %vm725_vm1, %v723_v56  ;;  %v913_v23 = vpop.permute.xlu0 %912 }
 0x14d   :  { %1082 = vmatmul.msk.f32.gmra.mxu1 %vm725_vm1, %v1467_v8  ;;  %1080 = vmatmul.msk.f32.gmra.mxu0 %vm725_vm1, %v724_v59  ;;  %v938_v32 = vpop.permute.xlu0 %937 }
 0x155   :  { %1083 = vmatmul.msk.f32.gmra.mxu1 %vm725_vm1, %v1476_v12 }
 0x15d   :  { %1084 = vmatmul.msk.f32.gmra.mxu1 %vm725_vm1, %v1485_v34  ;;  %v923_v34 = vpop.permute.xlu1 %922 }
 0x165   :  { %1085 = vmatmul.msk.f32.gmra.mxu1 %vm725_vm1, %v1492_v39 }
 0x16d   :  { %1086 = vmatmul.msk.f32.gmra.mxu1 %vm725_vm1, %v722_v49 }
 0x173   :  { %v767_v41 = vpop.f32.mrf.mxu3 }
 0x174   :  { %v873_v33 = vmax.f32 %v767_v41, 0.0 }
 0x175   :  { %1087 = vmatmul.msk.f32.gmra.mxu1 %vm725_vm1, %v723_v56 }
 0x176   :  { %v945_v46 = vmul.f32 %v1562_v22, %v873_v33 }
 0x17b   :  { %v770_v1 = vpop.f32.mrf.mxu3 }
 0x17c   :  { %v876_v9 = vmax.f32 %v770_v1, 0.0 }
 0x17d   :  { %1088 = vmatmul.msk.f32.gmra.mxu1 %vm725_vm1, %v724_v59 }
 0x17e   :  { %v948_v44 = vmul.f32 %v913_v23, %v876_v9 }
 0x180   :  { %v969_v18 = vadd.f32 %v948_v44, %v945_v46 }
 0x183   :  { %v773_v6 = vpop.f32.mrf.mxu3 }
 0x184   :  { %v879_v20 = vmax.f32 %v773_v6, 0.0 }
 0x186   :  { %v951_v17 = vmul.f32 %v1566_v42, %v879_v20 }
 0x188   :  { %v970_v45 = vadd.f32 %v969_v18, %v951_v17 }
 0x18b   :  { %v776_v10 = vpop.f32.mrf.mxu3 }
 0x18c   :  { %v882_v57 = vmax.f32 %v776_v10, 0.0 }
 0x18e   :  { %v954_v56 = vmul.f32 %v923_v34, %v882_v57 }
 0x190   :  { %v971_v53 = vadd.f32 %v970_v45, %v954_v56 }
 0x192   :  { %v808_v3 = vpop.f32.mrf.mxu0 }
 0x193   :  { %v779_v52 = vpop.f32.mrf.mxu3  ;;  %v874_v21 = vmax.f32 %v808_v3, 0.0  ;;  %v943_v3 = vpop.permute.xlu1 %942 }
 0x194   :  { %v885_v43 = vmax.f32 %v779_v52, 0.0 }
 0x195   :  { %v946_v13 = vmul.f32 %v1562_v22, %v874_v21 }
 0x196   :  { %v957_v36 = vmul.f32 %v1570_v48, %v885_v43 }
 0x198   :  { %v972_v0 = vadd.f32 %v971_v53, %v957_v36 }
 0x19a   :  { %v811_v7 = vpop.f32.mrf.mxu0 }
 0x19b   :  { %v877_v11 = vmax.f32 %v811_v7, 0.0  ;;  %v782_v12 = vpop.f32.mrf.mxu3 }
 0x19c   :  { %v888_v30 = vmax.f32 %v782_v12, 0.0 }
 0x19d   :  { %v949_v40 = vmul.f32 %v913_v23, %v877_v11 }
 0x19e   :  { %v960_v4 = vmul.f32 %v933_v62, %v888_v30 }
 0x19f   :  { %v982_v16 = vadd.f32 %v949_v40, %v946_v13 }
 0x1a0   :  { %v973_v7 = vadd.f32 %v972_v0, %v960_v4 }
 0x1a2   :  { %v814_v31 = vpop.f32.mrf.mxu0 }
 0x1a3   :  { %v880_v8 = vmax.f32 %v814_v31, 0.0  ;;  %v785_v28 = vpop.f32.mrf.mxu3 }
 0x1a4   :  { %v891_v5 = vmax.f32 %v785_v28, 0.0 }
 0x1a5   :  { %v952_v50 = vmul.f32 %v1566_v42, %v880_v8 }
 0x1a6   :  { %v963_v1 = vmul.f32 %v938_v32, %v891_v5 }
 0x1a7   :  { %v983_v26 = vadd.f32 %v982_v16, %v952_v50 }
 0x1a8   :  { %v974_v11 = vadd.f32 %v973_v7, %v963_v1 }
 0x1aa   :  { %v817_v14 = vpop.f32.mrf.mxu0 }
 0x1ab   :  { %v883_v27 = vmax.f32 %v817_v14, 0.0  ;;  %v788_v41 = vpop.f32.mrf.mxu3 }
 0x1ac   :  { %v894_v14 = vmax.f32 %v788_v41, 0.0 }
 0x1ad   :  { %v955_v39 = vmul.f32 %v923_v34, %v883_v27 }
 0x1ae   :  { %v966_v33 = vmul.f32 %v943_v3, %v894_v14 }
 0x1af   :  { %v984_v25 = vadd.f32 %v983_v26, %v955_v39 }
 0x1b0   :  { %v975_v46 = vadd.f32 %v974_v11, %v966_v33 }
 0x1b2   :  { %v820_v60 = vpop.f32.mrf.mxu0  ;;  %v976_v17 = vrot.slane %v975_v46, 4 }
 0x1b3   :  { %v886_v38 = vmax.f32 %v820_v60, 0.0 }
 0x1b4   :  { %v977_v39 = vadd.f32 %v976_v17, %v975_v46 }
 0x1b5   :  { %v958_v59 = vmul.f32 %v1570_v48, %v886_v38 }
 0x1b7   :  { %v985_v37 = vadd.f32 %v984_v25, %v958_v59 }
 0x1ba   :  { %v823_v47 = vpop.f32.mrf.mxu0 }
 0x1bb   :  { %v889_v54 = vmax.f32 %v823_v47, 0.0 }
 0x1bd   :  { %v961_v2 = vmul.f32 %v933_v62, %v889_v54 }
 0x1bf   :  { %v986_v63 = vadd.f32 %v985_v37, %v961_v2  ;;  %v1018_v2 = vlaneseq }
 0x1c1   :  { %vm1020_vm4 = vcmp.lt.s32.totalorder %v1018_v2, 384 }
 0x1c2   :  { %v1560_v15 = vpop.f32.mrf.mxu1  ;;  %v826_v51 = vpop.f32.mrf.mxu0 }
 0x1c3   :  { %v892_v24 = vmax.f32 %v826_v51, 0.0  ;;  %v875_v52 = vmax.f32 %v1560_v15, 0.0 }
 0x1c5   :  { %v964_v58 = vmul.f32 %v938_v32, %v892_v24  ;;  %v947_v13 = vmul.f32 %v1562_v22, %v875_v52 }
 0x1c7   :  { %v987_v31 = vadd.f32 %v986_v63, %v964_v58 }
 0x1ca   :  { %v1564_v29 = vpop.f32.mrf.mxu1  ;;  %v829_v55 = vpop.f32.mrf.mxu0 }
 0x1cb   :  { %v895_v35 = vmax.f32 %v829_v55, 0.0  ;;  %v878_v60 = vmax.f32 %v1564_v29, 0.0 }
 0x1cd   :  { %v967_v6 = vmul.f32 %v943_v3, %v895_v35  ;;  %v950_v9 = vmul.f32 %v913_v23, %v878_v60 }
 0x1cf   :  { %v988_v47 = vadd.f32 %v987_v31, %v967_v6  ;;  %v995_v27 = vadd.f32 %v950_v9, %v947_v13 }
 0x1d1   :  { %v989_v20 = vrot.slane %v988_v47, 4 }
 0x1d2   :  { %v855_v19 = vpop.f32.mrf.mxu1 }
 0x1d3   :  { %v881_v21 = vmax.f32 %v855_v19, 0.0  ;;  %v990_v57 = vadd.f32 %v989_v20, %v988_v47 }
 0x1d5   :  { %v953_v40 = vmul.f32 %v1566_v42, %v881_v21  ;;  %v991_v22 = vrot.slane %v990_v57, 2 }
 0x1d7   :  { %v996_v29 = vadd.f32 %v995_v27, %v953_v40  ;;  %v992_v45 = vadd.f32 %v991_v22, %v990_v57 }
 0x1d9   :  { %v993_v59 = vrot.slane %v992_v45, 1 }
 0x1da   :  { %v858_v49 = vpop.f32.mrf.mxu1 }
 0x1db   :  { %v884_v8 = vmax.f32 %v858_v49, 0.0  ;;  %v994_v36 = vadd.f32 %v993_v59, %v992_v45 }
 0x1dd   :  { %v956_v50 = vmul.f32 %v923_v34, %v884_v8  ;;  %v978_v34 = vrot.slane %v977_v39, 2  ;;  %v1011_v37 = vrot.slane %v994_v36, 7 }
 0x1df   :  { %v997_v18 = vadd.f32 %v996_v29, %v956_v50 }
 0x1e2   :  { %v861_v61 = vpop.f32.mrf.mxu1 }
 0x1e3   :  { %v887_v12 = vmax.f32 %v861_v61, 0.0 }
 0x1e5   :  { %v959_v15 = vmul.f32 %v1570_v48, %v887_v12  ;;  %v979_v48 = vadd.f32 %v978_v34, %v977_v39 }
 0x1e7   :  { %v998_v51 = vadd.f32 %v997_v18, %v959_v15  ;;  %v980_v53 = vrot.slane %v979_v48, 1 }
 0x1e9   :  { %v981_v61 = vadd.f32 %v980_v53, %v979_v48 }
 0x1ea   :  { %v864_v10 = vpop.f32.mrf.mxu1 }
 0x1eb   :  { %v890_v16 = vmax.f32 %v864_v10, 0.0  ;;  %v1014_v4 = vsel %vm1013_vm2, %v981_v61, %v1011_v37 }
 0x1ed   :  { %v962_v23 = vmul.f32 %v933_v62, %v890_v16 }
 0x1ef   :  { %v999_v26 = vadd.f32 %v998_v51, %v962_v23 }
 0x1f2   :  { %v867_v44 = vpop.f32.mrf.mxu1 }
 0x1f3   :  { %v893_v19 = vmax.f32 %v867_v44, 0.0 }
 0x1f5   :  { %v965_v38 = vmul.f32 %v938_v32, %v893_v19 }
 0x1f7   :  { %v1000_v43 = vadd.f32 %v999_v26, %v965_v38 }
 0x1fa   :  { %v870_v42 = vpop.f32.mrf.mxu1 }
 0x1fb   :  { %v896_v49 = vmax.f32 %v870_v42, 0.0 }
 0x1fd   :  { %v968_v56 = vmul.f32 %v943_v3, %v896_v49 }
 0x1ff   :  { %v1001_v28 = vadd.f32 %v1000_v43, %v968_v56 }
 0x201   :  { %v1002_v54 = vrot.slane %v1001_v28, 4 }
 0x203   :  { %v1003_v25 = vadd.f32 %v1002_v54, %v1001_v28 }
 0x205   :  { %v1004_v30 = vrot.slane %v1003_v25, 2 }
 0x207   :  { %v1005_v62 = vadd.f32 %v1004_v30, %v1003_v25 }
 0x209   :  { %v1006_v24 = vrot.slane %v1005_v62, 1 }
 0x20b   :  { %v1007_v32 = vadd.f32 %v1006_v24, %v1005_v62 }
 0x20d   :  { %v1012_v55 = vrot.slane %v1007_v32, 6 }
 0x20f   :  { %v1016_v0 = vsel %vm1015_vm3, %v1014_v4, %v1012_v55 }
 0x210   :  { %1022 = vst.msk [vmem:[#allocation7] sm:$0x7] %vm1020_vm4, %v1016_v0 }
 0x211   :  { %1033 = dma.vmem_to_hbm [thread:$0]  %s1029_s23, 48, %s1031_s26, [#allocation4]  }
 0x212   :  { %1184 = dma.done.wait [#allocation4], 48  }
 0x213   :  { %1185 = vsyncadd [#allocation4], 4294967248 }
 0x214   :  { %1038 = vsyncpa [#allocation3], 1 }
 0x215   :  { %1039 = vsyncpa [#allocation6], 1 }
 0x216   :  { %1040 = vsyncpa [#allocation4], 1 }

</bundles_post_ra>
